<compile_context>
chip_gen: v5e
topology: v5e:2x2
jax: 0.10.0
libtpu: 0.0.40
codegen_flags: <defaults>
</compile_context>

<pallas_src>
import functools

import jax
import jax.numpy as jnp
from jax import lax
from jax.experimental import pallas as pl
from jax.experimental.pallas import tpu as pltpu


# ---------------------------------------------------------------------------
# Pallas kernel: fused stride-1 'same' KxK conv + inference BatchNorm + PReLU
# ---------------------------------------------------------------------------

def _basic_conv_kernel(x_ref, w_ref, mask_ref, shift_ref, alpha_ref, o_ref,
                       *, width, ksize):
    """One grid step = G batch samples, flattened to (C_in, G*H*W).

    x_ref     : (C_in,  G*H*W)      activations (compute dtype)
    w_ref     : (C_out, K*K*C_in)   RefConv weight, tap-major, BN-scale folded
    mask_ref  : (K*K,   G*H*W)      0/1 boundary mask per tap (compute dtype)
    shift_ref : (C_out, 1)          BatchNorm shift = beta - mean * scale
    alpha_ref : (1, 1)  SMEM        PReLU negative slope
    o_ref     : (C_out, G*H*W)      float32 output
    """
    x = x_ref[...]
    n = x.shape[1]
    r = ksize // 2

    # im2col: K*K shifted + masked copies of x stacked along sublanes.
    taps = []
    t = 0
    for dy in range(-r, r + 1):
        for dx in range(-r, r + 1):
            s = dy * width + dx
            if s == 0:
                taps.append(x)                      # center tap: always valid
            else:
                shifted = pltpu.roll(x, shift=(-s) % n, axis=1)
                taps.append(shifted * mask_ref[t:t + 1, :])
            t += 1
    patches = jnp.concatenate(taps, axis=0)         # (K*K*C_in, G*H*W)

    # The entire conv (with BN scale pre-folded into the weight) as a single
    # MXU matmul with f32 accumulation.
    y = jnp.dot(w_ref[...], patches, preferred_element_type=jnp.float32)

    # Fused BatchNorm shift + PReLU.
    y = y + shift_ref[...]
    a = alpha_ref[0, 0]
    o_ref[...] = jnp.where(y >= 0, y, a * y)


# ---------------------------------------------------------------------------
# Host-side helpers (weight-space / constant preprocessing, plain JAX)
# ---------------------------------------------------------------------------

def refconv_effective_weight(w_base, w_map):
    """RefConv re-parameterization: basis weight + per-2D-kernel convmap."""
    # TODO(synk): RefConv's class body is not included in the provided spec;
    # this follows the standard published RefConv (effective kernel = basis
    # weight + depthwise map_k x map_k convmap over each 2D kernel slice,
    # groups = O*I, bias=None), done here as a tiny weight-space transform.
    o, i, k, _ = w_base.shape
    mk = w_map.shape[-1]
    flat = w_base.reshape(1, o * i, k, k)
    delta = lax.conv_general_dilated(
        flat, w_map, window_strides=(1, 1),
        padding=[(mk // 2, mk // 2)] * 2,
        dimension_numbers=('NCHW', 'OIHW', 'NCHW'),
        feature_group_count=o * i,
        precision=lax.Precision.HIGHEST)
    return w_base + delta.reshape(o, i, k, k)


def _build_tap_masks(h, w, g, ksize, dtype):
    """0/1 validity mask per conv tap over the flat (G*H*W,) spatial axis."""
    r = ksize // 2
    hw = h * w
    pos = jnp.arange(g * hw, dtype=jnp.int32) % hw
    row, col = pos // w, pos % w
    masks = []
    for dy in range(-r, r + 1):
        for dx in range(-r, r + 1):
            ok = ((row + dy >= 0) & (row + dy < h) &
                  (col + dx >= 0) & (col + dx < w))
            masks.append(ok)
    return jnp.stack(masks, axis=0).astype(dtype)    # (K*K, G*H*W)


def _pick_samples_per_step(batch, cin, cout, ksize, hw,
                           budget_bytes=12 << 20, elem_bytes=4):
    """Largest divisor of `batch` fitting the VMEM budget, lane-aligned."""
    def step_bytes(g):
        n = g * hw
        return elem_bytes * n * (2 * cin                     # dbl-buffered input
                                 + 2 * cout                  # dbl-buffered output
                                 + ksize * ksize * (cin + 1) # im2col + masks
                                 + 2 * cout)                 # matmul/epilogue temps
    for g in range(batch, 0, -1):
        if batch % g != 0:
            continue
        lane_ok = (g == batch) or ((g * hw) % 128 == 0)
        if lane_ok and step_bytes(g) <= budget_bytes:
            return g
    return batch   # fallback: whole batch in one grid step


def basic_conv_forward(x, params, *, stride=1, padding=None,
                       compute_dtype=jnp.float32):
    """Pallas BasicConv forward: PReLU(BatchNorm2d(RefConv(x))), NCHW in/out."""
    b, cin, h, w = x.shape
    w_base = params['w_base']
    cout, cin_w, k, _ = w_base.shape
    assert cin_w == cin
    if padding is None:
        padding = k // 2
    # TODO(synk): only stride=1 with 'same' padding (padding == K//2) is
    # implemented (the configuration BasicConv is used with in TRRHA).
    assert stride == 1 and padding == k // 2 and k % 2 == 1

    hw = h * w
    n_total = b * hw

    # ---- weight-space / per-channel preprocessing (tiny, plain JAX) ----
    w_eff = refconv_effective_weight(w_base, params['w_map'])
    # tap-major flattening: w_flat[o, (ky*K + kx)*C_in + i] = w_eff[o, i, ky, kx]
    w_flat = jnp.transpose(w_eff, (0, 2, 3, 1)).reshape(cout, k * k * cin)

    eps = 1e-5
    # TODO(synk): BatchNorm2d uses inference-mode running statistics; train-mode
    # batch statistics (a cross-batch reduction pass) are not computed in-kernel.
    scale = params['bn_gamma'] / jnp.sqrt(params['bn_var'] + eps)
    shift = params['bn_beta'] - params['bn_mean'] * scale
    # Fold BN scale into the conv weight (host-side, f32) -> kernel only adds shift.
    w_scaled = (w_flat * scale[:, None]).astype(compute_dtype)
    shift = shift.reshape(cout, 1).astype(jnp.float32)
    alpha = jnp.asarray(params['prelu_alpha'], jnp.float32).reshape(1, 1)

    # ---- lane-dense activation layout: (C_in, B*H*W) ----
    x_cf = jnp.transpose(x, (1, 0, 2, 3)).reshape(cin, n_total)
    x_cf = x_cf.astype(compute_dtype)

    g = _pick_samples_per_step(b, cin, cout, k, hw)
    n_blk = g * hw
    masks = _build_tap_masks(h, w, g, k, compute_dtype)

    kernel = functools.partial(_basic_conv_kernel, width=w, ksize=k)

    out_flat = pl.pallas_call(
        kernel,
        out_shape=jax.ShapeDtypeStruct((cout, n_total), jnp.float32),
        grid_spec=pltpu.PrefetchScalarGridSpec(
            num_scalar_prefetch=0,
            grid=(b // g,),
            in_specs=[
                pl.BlockSpec((cin, n_blk), lambda t: (0, t)),         # activations
                pl.BlockSpec((cout, k * k * cin), lambda t: (0, 0)),  # conv weight (BN-scaled)
                pl.BlockSpec((k * k, n_blk), lambda t: (0, 0)),       # tap masks
                pl.BlockSpec((cout, 1), lambda t: (0, 0)),            # BN shift
                pl.BlockSpec(memory_space=pltpu.MemorySpace.SMEM),    # PReLU alpha
            ],
            out_specs=pl.BlockSpec((cout, n_blk), lambda t: (0, t)),
        ),
        compiler_params=pltpu.CompilerParams(
            dimension_semantics=("parallel",),   # independent samples -> 2 TCs on v7x
            vmem_limit_bytes=32 << 20,
        ),
    )(x_cf, w_scaled, masks, shift, alpha)

    return jnp.transpose(out_flat.reshape(cout, b, h, w), (1, 0, 2, 3))


# ---------------------------------------------------------------------------
# Pure-JAX reference
# ---------------------------------------------------------------------------

def basic_conv_reference(x, params, *, stride=1, padding=None):
    w_base = params['w_base']
    k = w_base.shape[-1]
    if padding is None:
        padding = k // 2
    w_eff = refconv_effective_weight(w_base, params['w_map'])
    y = lax.conv_general_dilated(
        x, w_eff, window_strides=(stride, stride),
        padding=[(padding, padding)] * 2,
        dimension_numbers=('NCHW', 'OIHW', 'NCHW'),
        precision=lax.Precision.HIGHEST)
    eps = 1e-5
    scale = params['bn_gamma'] / jnp.sqrt(params['bn_var'] + eps)
    shift = params['bn_beta'] - params['bn_mean'] * scale
    y = y * scale[None, :, None, None] + shift[None, :, None, None]
    a = params['prelu_alpha']
    return jnp.where(y >= 0, y, a * y)


# ---------------------------------------------------------------------------
# Parameters
# ---------------------------------------------------------------------------

def init_params(key, cin, cout, ksize=3, map_k=3):
    ks = jax.random.split(key, 6)
    std = 0.3
    return {
        # RefConv basis kernel + per-2D-kernel convmap weights
        'w_base': std * jax.random.normal(ks[0], (cout, cin, ksize, ksize), jnp.float32),
        'w_map': 0.1 * jax.random.normal(ks[1], (cout * cin, 1, map_k, map_k), jnp.float32),
        # BatchNorm2d (eps=1e-5, affine) -- inference-mode running stats
        'bn_gamma': 1.0 + 0.1 * jax.random.normal(ks[2], (cout,), jnp.float32),
        'bn_beta': 0.1 * jax.random.normal(ks[3], (cout,), jnp.float32),
        'bn_mean': 0.2 * jax.random.normal(ks[4], (cout,), jnp.float32),
        'bn_var': 1.0 + 0.3 * jnp.abs(jax.random.normal(ks[5], (cout,), jnp.float32)),
        # PReLU(num_parameters=1, init=0.25)
        'prelu_alpha': jnp.float32(0.25),
    }


if __name__ == "__main__":
    b, cin, cout, h, w = 2, 8, 16, 16, 16
    key = jax.random.PRNGKey(0)
    kx, kp = jax.random.split(key)
    x = jax.random.normal(kx, (b, cin, h, w), jnp.float32)
    params = init_params(kp, cin, cout, ksize=3)

    ref = basic_conv_reference(x, params)

    # f32 MXU path: tight check.
    out = jax.block_until_ready(basic_conv_forward(x, params))
    assert out.shape == (b, cout, h, w)
    if not jnp.allclose(out, ref, atol=2e-2, rtol=2e-2):
        err = float(jnp.max(jnp.abs(out - ref)))
        raise AssertionError(f"Pallas BasicConv mismatch vs reference, max abs err = {err}")

    print("KERNEL_OK")
</pallas_src>

<mosaic_0001>
module attributes {stable_mosaic.version = 11 : i64} {
  func.func @_basic_conv_kernel(%arg0: i32, %arg1: memref<8x512xf32, #tpu.memory_space<vmem>>, %arg2: memref<16x72xf32, #tpu.memory_space<vmem>>, %arg3: memref<9x512xf32, #tpu.memory_space<vmem>>, %arg4: memref<16x1xf32, #tpu.memory_space<vmem>>, %arg5: memref<1x1xf32, #tpu.memory_space<smem>>, %arg6: memref<16x512xf32, #tpu.memory_space<vmem>>) attributes {dimension_semantics = [#tpu.dimension_semantics<parallel>], iteration_bounds = array<i64: 1>, scalar_prefetch = 0 : i64, scratch_operands = 0 : i64, tpu.core_type = #tpu.core_type<tc>, window_params = [{transform_indices = @transform_0, window_bounds = array<i64: 8, 512>}, {pipeline_mode = #tpu.pipeline_mode<synchronous>, transform_indices = @transform_1, window_bounds = array<i64: 16, 72>}, {pipeline_mode = #tpu.pipeline_mode<synchronous>, transform_indices = @transform_2, window_bounds = array<i64: 9, 512>}, {pipeline_mode = #tpu.pipeline_mode<synchronous>, transform_indices = @transform_3, window_bounds = array<i64: 16, 1>}, {transform_indices = @transform_4, window_bounds = array<i64: 1, 1>}, {transform_indices = @transform_5, window_bounds = array<i64: 16, 512>}]} {
    %c0 = arith.constant 0 : index
    %c0_0 = arith.constant 0 : index
    %0 = vector.load %arg1[%c0, %c0_0] : memref<8x512xf32, #tpu.memory_space<vmem>>, vector<8x512xf32>
    %c17_i32 = arith.constant 17 : i32
    %1 = tpu.dynamic_rotate %0 by %c17_i32 dim 1 : vector<8x512xf32>, i32 -> vector<8x512xf32>
    %c0_1 = arith.constant 0 : index
    %c0_2 = arith.constant 0 : index
    %2 = vector.load %arg3[%c0_1, %c0_2] : memref<9x512xf32, #tpu.memory_space<vmem>>, vector<1x512xf32>
    %3 = vector.broadcast %2 : vector<1x512xf32> to vector<8x512xf32>
    %4 = arith.mulf %1, %3 : vector<8x512xf32>
    %c16_i32 = arith.constant 16 : i32
    %5 = tpu.dynamic_rotate %0 by %c16_i32 dim 1 : vector<8x512xf32>, i32 -> vector<8x512xf32>
    %c1 = arith.constant 1 : index
    %c0_3 = arith.constant 0 : index
    %6 = vector.load %arg3[%c1, %c0_3] : memref<9x512xf32, #tpu.memory_space<vmem>>, vector<1x512xf32>
    %7 = vector.broadcast %6 : vector<1x512xf32> to vector<8x512xf32>
    %8 = arith.mulf %5, %7 : vector<8x512xf32>
    %c15_i32 = arith.constant 15 : i32
    %9 = tpu.dynamic_rotate %0 by %c15_i32 dim 1 : vector<8x512xf32>, i32 -> vector<8x512xf32>
    %c2 = arith.constant 2 : index
    %c0_4 = arith.constant 0 : index
    %10 = vector.load %arg3[%c2, %c0_4] : memref<9x512xf32, #tpu.memory_space<vmem>>, vector<1x512xf32>
    %11 = vector.broadcast %10 : vector<1x512xf32> to vector<8x512xf32>
    %12 = arith.mulf %9, %11 : vector<8x512xf32>
    %c1_i32 = arith.constant 1 : i32
    %13 = tpu.dynamic_rotate %0 by %c1_i32 dim 1 : vector<8x512xf32>, i32 -> vector<8x512xf32>
    %c3 = arith.constant 3 : index
    %c0_5 = arith.constant 0 : index
    %14 = vector.load %arg3[%c3, %c0_5] : memref<9x512xf32, #tpu.memory_space<vmem>>, vector<1x512xf32>
    %15 = vector.broadcast %14 : vector<1x512xf32> to vector<8x512xf32>
    %16 = arith.mulf %13, %15 : vector<8x512xf32>
    %c511_i32 = arith.constant 511 : i32
    %17 = tpu.dynamic_rotate %0 by %c511_i32 dim 1 : vector<8x512xf32>, i32 -> vector<8x512xf32>
    %c5 = arith.constant 5 : index
    %c0_6 = arith.constant 0 : index
    %18 = vector.load %arg3[%c5, %c0_6] : memref<9x512xf32, #tpu.memory_space<vmem>>, vector<1x512xf32>
    %19 = vector.broadcast %18 : vector<1x512xf32> to vector<8x512xf32>
    %20 = arith.mulf %17, %19 : vector<8x512xf32>
    %c497_i32 = arith.constant 497 : i32
    %21 = tpu.dynamic_rotate %0 by %c497_i32 dim 1 : vector<8x512xf32>, i32 -> vector<8x512xf32>
    %c6 = arith.constant 6 : index
    %c0_7 = arith.constant 0 : index
    %22 = vector.load %arg3[%c6, %c0_7] : memref<9x512xf32, #tpu.memory_space<vmem>>, vector<1x512xf32>
    %23 = vector.broadcast %22 : vector<1x512xf32> to vector<8x512xf32>
    %24 = arith.mulf %21, %23 : vector<8x512xf32>
    %c496_i32 = arith.constant 496 : i32
    %25 = tpu.dynamic_rotate %0 by %c496_i32 dim 1 : vector<8x512xf32>, i32 -> vector<8x512xf32>
    %c7 = arith.constant 7 : index
    %c0_8 = arith.constant 0 : index
    %26 = vector.load %arg3[%c7, %c0_8] : memref<9x512xf32, #tpu.memory_space<vmem>>, vector<1x512xf32>
    %27 = vector.broadcast %26 : vector<1x512xf32> to vector<8x512xf32>
    %28 = arith.mulf %25, %27 : vector<8x512xf32>
    %c495_i32 = arith.constant 495 : i32
    %29 = tpu.dynamic_rotate %0 by %c495_i32 dim 1 : vector<8x512xf32>, i32 -> vector<8x512xf32>
    %c8 = arith.constant 8 : index
    %c0_9 = arith.constant 0 : index
    %30 = vector.load %arg3[%c8, %c0_9] : memref<9x512xf32, #tpu.memory_space<vmem>>, vector<1x512xf32>
    %31 = vector.broadcast %30 : vector<1x512xf32> to vector<8x512xf32>
    %32 = arith.mulf %29, %31 : vector<8x512xf32>
    %33 = tpu.concatenate %4, %8, %12, %16, %0, %20, %24, %28, %32 in 0 : vector<8x512xf32>, vector<8x512xf32>, vector<8x512xf32>, vector<8x512xf32>, vector<8x512xf32>, vector<8x512xf32>, vector<8x512xf32>, vector<8x512xf32>, vector<8x512xf32> -> vector<72x512xf32>
    %c0_10 = arith.constant 0 : index
    %c0_11 = arith.constant 0 : index
    %34 = vector.load %arg2[%c0_10, %c0_11] : memref<16x72xf32, #tpu.memory_space<vmem>>, vector<16x72xf32>
    %cst = arith.constant dense<0.000000e+00> : vector<16x512xf32>
    %35 = tpu.matmul %34, %33, %cst {dimension_numbers = #tpu.dot_dimension_numbers<[1], [0], [0], [1], [0, 0, 1, 1], [], []>} : vector<16x72xf32>, vector<72x512xf32>, vector<16x512xf32> -> vector<16x512xf32>
    %c0_12 = arith.constant 0 : index
    %c0_13 = arith.constant 0 : index
    %36 = vector.load %arg4[%c0_12, %c0_13] : memref<16x1xf32, #tpu.memory_space<vmem>>, vector<16x1xf32>
    %37 = vector.broadcast %36 : vector<16x1xf32> to vector<16x512xf32>
    %38 = arith.addf %35, %37 : vector<16x512xf32>
    %c0_14 = arith.constant 0 : index
    %c0_15 = arith.constant 0 : index
    %39 = memref.load %arg5[%c0_14, %c0_15] : memref<1x1xf32, #tpu.memory_space<smem>>
    %cst_16 = arith.constant 0.000000e+00 : f32
    %40 = vector.broadcast %cst_16 : f32 to vector<16x512xf32>
    %41 = arith.cmpf oge, %38, %40 : vector<16x512xf32>
    %42 = vector.broadcast %39 : f32 to vector<16x512xf32>
    %43 = arith.mulf %42, %38 : vector<16x512xf32>
    %44 = arith.select %41, %38, %43 : vector<16x512xi1>, vector<16x512xf32>
    %c0_17 = arith.constant 0 : index
    %c0_18 = arith.constant 0 : index
    %45 = vector.load %arg6[%c0_17, %c0_18] : memref<16x512xf32, #tpu.memory_space<vmem>>, vector<16x512xf32>
    tpu.vector_store %arg6[%c0_17, %c0_18], %44 {strides = array<i32>} : memref<16x512xf32, #tpu.memory_space<vmem>>, vector<16x512xf32>,
    return
  }
  func.func @transform_0(%arg0: i32) -> (i32, i32) {
    %c0_i32 = arith.constant 0 : i32
    %c0_i32_0 = arith.constant 0 : i32
    return %c0_i32, %arg0 : i32, i32
  }
  func.func @transform_1(%arg0: i32) -> (i32, i32) {
    %c0_i32 = arith.constant 0 : i32
    %c0_i32_0 = arith.constant 0 : i32
    %c0_i32_1 = arith.constant 0 : i32
    return %c0_i32, %c0_i32_0 : i32, i32
  }
  func.func @transform_2(%arg0: i32) -> (i32, i32) {
    %c0_i32 = arith.constant 0 : i32
    %c0_i32_0 = arith.constant 0 : i32
    %c0_i32_1 = arith.constant 0 : i32
    return %c0_i32, %c0_i32_0 : i32, i32
  }
  func.func @transform_3(%arg0: i32) -> (i32, i32) {
    %c0_i32 = arith.constant 0 : i32
    %c0_i32_0 = arith.constant 0 : i32
    %c0_i32_1 = arith.constant 0 : i32
    return %c0_i32, %c0_i32_0 : i32, i32
  }
  func.func @transform_4(%arg0: i32) -> (i32, i32) {
    %c0_i32 = arith.constant 0 : i32
    %c0_i32_0 = arith.constant 0 : i32
    %c0_i32_1 = arith.constant 0 : i32
    return %c0_i32, %c0_i32_0 : i32, i32
  }
  func.func @transform_5(%arg0: i32) -> (i32, i32) {
    %c0_i32 = arith.constant 0 : i32
    %c0_i32_0 = arith.constant 0 : i32
    return %c0_i32, %arg0 : i32, i32
  }
}

</mosaic_0001>

<bundles_post_ra>
// kernel: tpu_custom_call.1
= control target key start
LH: loop header
LB: loop body
LE: loop exit
PB: predicated region body
PF: predicated region fallthrough
CT: control target
= control target key end

     0   :  { %11 = vsyncpa [#allocation4], 0  ;;  %s820_s0 = inlined_call_operand.hbm [shape: f32[8,512], index: 0, kind: input, shape index: {}]   ;;  %s821_s1 = inlined_call_operand.vmem [shape: f32[16,72], index: 1, kind: input, shape index: {}]   ;;  %s822_s2 = inlined_call_operand.hbm [shape: f32[9,512], index: 2, kind: input, shape index: {}]   ;;  %s823_s3 = inlined_call_operand.vmem [shape: f32[16,1], index: 3, kind: input, shape index: {}]   ;;  %s824_s4 = inlined_call_operand.<no memory space> [shape: f32[1,1], index: 4, kind: input, shape index: {}]   ;;  %s825_s5 = inlined_call_operand.hbm [shape: f32[16,512], index: 5, kind: output, shape index: {}]  }
   0x1   :  { %12 = vsyncpa [#allocation7], 0 }
   0x2   :  { %13 = vsyncpa [#allocation5], 0  ;;  %s19_s20 = sshll.u32 %s820_s0, 4  ;;  %s550_s21 = smov [#allocation3]   ;;  %s20_s20 = int_to_ptr.hbm [resolvable:$true] %s19_s20 }
   0x3   :  { %s21_s22 = sshll.u32 %s550_s21, 4  ;;  %s31_s25 = sshll.u32 %s822_s2, 4  ;;  %s22_s22 = int_to_ptr.vmem [resolvable:$true] %s21_s22  ;;  %s32_s25 = int_to_ptr.hbm [resolvable:$true] %s31_s25 }
   0x4   :  { %24 = dma.hbm_to_vmem [thread:$0]  %s20_s20, 512, %s22_s22, [#allocation4]  }
   0x5   :  { %s551_s26 = smov [#allocation6]   ;;  %s552_s28 = smov 512  }
   0x6   :  { %s33_s27 = sshll.u32 %s551_s26, 4  ;;  %s553_s29 = smov 32   ;;  %s34_s27 = int_to_ptr.vmem [resolvable:$true] %s33_s27 }
   0x7   :  { %39 = dma.hbm_to_vmem [thread:$0]  %s32_s25, 1024, %s34_s27, [#allocation7], %s552_s28, %s552_s28, %s553_s29  }
   0x8   :  { %544 = dma.done.wait [#allocation4], 512  }
   0x9   :  { %545 = vsyncadd [#allocation4], 4294966784 }
   0xa   :  { %546 = dma.done.wait [#allocation7], 1024  }
   0xb   :  { %547 = vsyncadd [#allocation7], 4294966272  ;;  %v603_v0 = vld [vmem:[#allocation3 + $0x18] sm:$0xff]  ;;  %v605_v1 = vld [vmem:[#allocation3 + $0x10] sm:$0xff]  ;;  %s554_s0 = smov 111   ;;  %s555_s2 = smov 112   ;;  %v64_v6 = vlaneseq }
   0xc   :  { %v607_v2 = vld [vmem:[#allocation3] sm:$0xff]  ;;  %259 = vrot.lane.b32.xlu1 %v603_v0, %s554_s0  ;;  %229 = vrot.lane.b32.xlu2 %v605_v1, %s555_s2  ;;  %s556_s30 = smov 113   ;;  %s557_s6 = smov 127   ;;  %v621_v3 = vld [vmem:[#allocation3 + $0x8] sm:$0xff]  ;;  %vm295_vm8 = vcmask 588800  }
   0xd   :  { %253 = vrot.lane.b32.xlu0 %v607_v2, %s554_s0  ;;  %s558_s7 = smov 1   ;;  %s559_s8 = smov 15   ;;  %v645_v7 = vand.u32 127, %v64_v6  ;;  %v647_v8 = vld [vmem:[#allocation6 + $0x20] ss:$8 sm:$0xf] }
   0xe   :  { %s560_s9 = smov 16   ;;  %s561_s10 = smov 17   ;;  %v272_v9 = vperm.slane %v647_v8, 3  ;;  %v653_v15 = vld [vmem:[#allocation6 + $0x7] ss:$8 sm:$0xf] }
   0xf   :  { %vm261_vm0 = vcmp.lt.s32.totalorder %v645_v7, 111  ;;  %v244_v16 = vperm.slane %v653_v15, 3  ;;  %vm233_vm1 = vcmp.lt.s32.totalorder %v645_v7, 112  ;;  %v271_v17 = vperm.slane %v647_v8, 2  ;;  %s434_s22 = sshll.u32 %s825_s5, 4  ;;  %s435_s22 = int_to_ptr.hbm [resolvable:$true] %s434_s22 }
  0x10   :  { %v243_v21 = vperm.slane %v653_v15, 2  ;;  %v211_v27 = vld [vmem:[#allocation6 + $0x6] ss:$8 sm:$0xf]  ;;  %vm205_vm2 = vcmp.lt.s32.totalorder %v645_v7, 113  ;;  %vm177_vm3 = vcmp.lt.s32.totalorder %v645_v7, 127 }
  0x11   :  { %v215_v29 = vperm.slane %v211_v27, 2  ;;  %v216_v30 = vperm.slane %v211_v27, 3  ;;  %v673_v38 = vld [vmem:[#allocation6 + $0x5] ss:$8 sm:$0xf]  ;;  %v269_v48 = vperm.slane %v647_v8, 0 }
  0x12   :  { %v187_v39 = vperm.slane %v673_v38, 2  ;;  %v188_v40 = vperm.slane %v673_v38, 3  ;;  %v270_v49 = vperm.slane %v647_v8, 1  ;;  %v241_v52 = vperm.slane %v653_v15, 0 }
  0x13   :  { %v242_v53 = vperm.slane %v653_v15, 1  ;;  %v213_v60 = vperm.slane %v211_v27, 0  ;;  %v214_v61 = vperm.slane %v211_v27, 1  ;;  %vm149_vm4 = vcmp.lt.s32.totalorder %v645_v7, 1 }
  0x14   :  { %231 = vrot.lane.b32.xlu2 %v603_v0, %s555_s2  ;;  %225 = vrot.lane.b32.xlu1 %v607_v2, %s555_s2  ;;  %vm121_vm5 = vcmp.lt.s32.totalorder %v645_v7, 15  ;;  %v732_v27 = vld [vmem:[#allocation6 + $0x1] ss:$8 sm:$0xf]  ;;  %vm93_vm6 = vcmp.lt.s32.totalorder %v645_v7, 16  ;;  %vm66_vm7 = vcmp.lt.s32.totalorder %v645_v7, 17 }
  0x15   :  { %257 = vrot.lane.b32.xlu0 %v605_v1, %s554_s0 }
  0x1c   :  { %203 = vrot.lane.b32.xlu2 %v603_v0, %s556_s30  ;;  %201 = vrot.lane.b32.xlu1 %v605_v1, %s556_s30 }
  0x1d   :  { %197 = vrot.lane.b32.xlu0 %v607_v2, %s556_s30 }
  0x24   :  { %175 = vrot.lane.b32.xlu2 %v603_v0, %s557_s6  ;;  %173 = vrot.lane.b32.xlu1 %v605_v1, %s557_s6 }
  0x25   :  { %169 = vrot.lane.b32.xlu0 %v607_v2, %s557_s6 }
  0x2c   :  { %143 = vrot.lane.b32.xlu2 %v621_v3, %s558_s7  ;;  %227 = vrot.lane.b32.xlu1 %v621_v3, %s555_s2 }
  0x2d   :  { %255 = vrot.lane.b32.xlu0 %v621_v3, %s554_s0 }
  0x34   :  { %199 = vrot.lane.b32.xlu2 %v621_v3, %s556_s30  ;;  %147 = vrot.lane.b32.xlu1 %v603_v0, %s558_s7 }
  0x35   :  { %145 = vrot.lane.b32.xlu0 %v605_v1, %s558_s7 }
  0x3c   :  { %119 = vrot.lane.b32.xlu2 %v603_v0, %s559_s8  ;;  %117 = vrot.lane.b32.xlu1 %v605_v1, %s559_s8 }
  0x3d   :  { %115 = vrot.lane.b32.xlu0 %v621_v3, %s559_s8 }
  0x44   :  { %89 = vrot.lane.b32.xlu2 %v605_v1, %s560_s9  ;;  %87 = vrot.lane.b32.xlu1 %v621_v3, %s560_s9 }
  0x45   :  { %171 = vrot.lane.b32.xlu0 %v621_v3, %s557_s6 }
  0x4c   :  { %60 = vrot.lane.b32.xlu2 %v605_v1, %s561_s10  ;;  %58 = vrot.lane.b32.xlu1 %v621_v3, %s561_s10 }
  0x4d   :  { %91 = vrot.lane.b32.xlu0 %v603_v0, %s560_s9 }
  0x54   :  { %113 = vrot.lane.b32.xlu2 %v607_v2, %s559_s8  ;;  %141 = vrot.lane.b32.xlu1 %v607_v2, %s558_s7 }
  0x55   :  { %62 = vrot.lane.b32.xlu0 %v603_v0, %s561_s10 }
  0x5c   :  { %56 = vrot.lane.b32.xlu1 %v607_v2, %s561_s10 }
  0x5d   :  { %85 = vrot.lane.b32.xlu0 %v607_v2, %s560_s9 }
  0x66   :  { %v643_v4 = vpop.permute.xlu2 %229 }
  0x6e   :  { %v232_v5 = vpop.permute.xlu2 %231 }
  0x6f   :  { %v234_v22 = vsel %vm233_vm1, %v643_v4, %v232_v5 }
  0x70   :  { %v251_v28 = vmul.f32 %v243_v21, %v234_v22 }
  0x76   :  { %v204_v10 = vpop.permute.xlu2 %203 }
  0x7e   :  { %v260_v11 = vpop.permute.xlu1 %259  ;;  %v176_v23 = vpop.permute.xlu2 %175 }
  0x7f   :  { %v254_v12 = vpop.permute.xlu0 %253 }
  0x80   :  { %v265_v13 = vsel %vm261_vm0, %v260_v11, %v254_v12 }
  0x81   :  { %v280_v14 = vmul.f32 %v272_v9, %v265_v13 }
  0x83   :  { %378 = vmatpush.msra.mxu3 %v280_v14 }
  0x86   :  { %v226_v18 = vpop.permute.xlu1 %225  ;;  %v671_v37 = vpop.permute.xlu2 %143 }
  0x87   :  { %v237_v19 = vsel %vm233_vm1, %v232_v5, %v226_v18  ;;  %v258_v20 = vpop.permute.xlu0 %257 }
  0x88   :  { %v262_v24 = vsel %vm261_vm0, %v258_v20, %v260_v11  ;;  %v252_v25 = vmul.f32 %v244_v16, %v237_v19 }
  0x89   :  { %v279_v26 = vmul.f32 %v271_v17, %v262_v24  ;;  %v722_v17 = vld [vmem:[#allocation6 + $0x2] ss:$8 sm:$0xf] }
  0x8a   :  { %379 = vmatpush.msra.mxu3 %v252_v25  ;;  %v131_v19 = vperm.slane %v722_v17, 2 }
  0x8b   :  { %355 = vmatpush.msra.mxu2 %v279_v26 }
  0x8d   :  { %356 = vmatpush.msra.mxu2 %v251_v28  ;;  %v103_v28 = vperm.slane %v732_v27, 2 }
  0x8e   :  { %v202_v31 = vpop.permute.xlu1 %201  ;;  %v200_v47 = vpop.permute.xlu2 %199 }
  0x8f   :  { %v206_v32 = vsel %vm205_vm2, %v202_v31, %v204_v10  ;;  %v198_v33 = vpop.permute.xlu0 %197  ;;  %v207_v62 = vsel %vm205_vm2, %v200_v47, %v202_v31 }
  0x90   :  { %v209_v34 = vsel %vm205_vm2, %v204_v10, %v198_v33  ;;  %v223_v35 = vmul.f32 %v215_v29, %v206_v32  ;;  %v208_v63 = vsel %vm205_vm2, %v198_v33, %v200_v47  ;;  %v222_v6 = vmul.f32 %v214_v61, %v207_v62 }
  0x91   :  { %v224_v36 = vmul.f32 %v216_v30, %v209_v34  ;;  %v221_v5 = vmul.f32 %v213_v60, %v208_v63  ;;  %v185_v29 = vperm.slane %v673_v38, 0  ;;  %v186_v30 = vperm.slane %v673_v38, 1 }
  0x92   :  { %357 = vmatpush.msra.mxu2 %v223_v35 }
  0x93   :  { %380 = vmatpush.msra.mxu3 %v224_v36 }
  0x96   :  { %v678_v41 = vpop.permute.xlu1 %173  ;;  %v712_v10 = vpop.permute.xlu2 %119 }
  0x97   :  { %v178_v42 = vsel %vm177_vm3, %v678_v41, %v176_v23  ;;  %v683_v43 = vpop.permute.xlu0 %169 }
  0x98   :  { %v181_v44 = vsel %vm177_vm3, %v176_v23, %v683_v43  ;;  %v195_v45 = vmul.f32 %v187_v39, %v178_v42  ;;  %v749_v42 = vld [vmem:[#allocation6] ss:$8 sm:$0xf] }
  0x99   :  { %v196_v46 = vmul.f32 %v188_v40, %v181_v44  ;;  %v75_v44 = vperm.slane %v749_v42, 2 }
  0x9a   :  { %358 = vmatpush.msra.mxu2 %v195_v45  ;;  %v104_v45 = vperm.slane %v732_v27, 3 }
  0x9b   :  { %381 = vmatpush.msra.mxu3 %v196_v46  ;;  %v283_v46 = vld [vmem:[%s823_s3] sm:$0xff] }
  0x9c   :  { %359 = vmatpush.msra.mxu2 %v605_v1 }
  0x9d   :  { %382 = vmatpush.msra.mxu3 %v603_v0  ;;  %v707_v0 = vld [vmem:[#allocation6 + $0x3] ss:$8 sm:$0xf] }
  0x9e   :  { %v228_v50 = vpop.permute.xlu1 %227  ;;  %v159_v8 = vperm.slane %v707_v0, 2  ;;  %v160_v9 = vperm.slane %v707_v0, 3  ;;  %v90_v23 = vpop.permute.xlu2 %89 }
  0x9f   :  { %v256_v51 = vpop.permute.xlu0 %255  ;;  %v235_v54 = vsel %vm233_vm1, %v228_v50, %v643_v4  ;;  %v236_v55 = vsel %vm233_vm1, %v226_v18, %v228_v50  ;;  %v132_v18 = vperm.slane %v722_v17, 3  ;;  %v281_v50 = vld [vmem:[%s821_s1] sm:$0xff] }
  0xa0   :  { %v264_v56 = vsel %vm261_vm0, %v254_v12, %v256_v51  ;;  %v263_v57 = vsel %vm261_vm0, %v256_v51, %v258_v20  ;;  %v249_v1 = vmul.f32 %v241_v52, %v236_v55  ;;  %v250_v4 = vmul.f32 %v242_v53, %v235_v54 }
  0xa1   :  { %v277_v58 = vmul.f32 %v269_v48, %v264_v56  ;;  %v278_v59 = vmul.f32 %v270_v49, %v263_v57  ;;  %v562_v49 = vmov 0   ;;  %v157_v53 = vperm.slane %v707_v0, 0 }
  0xa2   :  { %471 = vset.pattern.permute.xlu0 %v562_v49  ;;  %470 = vset.pattern.permute.xlu2 %v562_v49  ;;  %v158_v54 = vperm.slane %v707_v0, 1  ;;  %v76_v55 = vperm.slane %v749_v42, 3  ;;  %v129_v57 = vperm.slane %v722_v17, 0 }
  0xa3   :  { %309 = vmatpush.msra.mxu0 %v277_v58  ;;  %332 = vmatpush.msra.mxu1 %v278_v59  ;;  %v130_v58 = vperm.slane %v722_v17, 1 }
  0xa4   :  { %287 = vperm.xlu2 %470, %v283_v46  }
  0xa5   :  { %310 = vmatpush.msra.mxu0 %v249_v1  ;;  %333 = vmatpush.msra.mxu1 %v250_v4 }
  0xa6   :  { %v714_v11 = vpop.permute.xlu1 %147  ;;  %v61_v38 = vpop.permute.xlu2 %60 }
  0xa7   :  { %311 = vmatpush.msra.mxu0 %v221_v5  ;;  %334 = vmatpush.msra.mxu1 %v222_v6  ;;  %v146_v12 = vpop.permute.xlu0 %145  ;;  %v282_v5 = vld [vmem:[%s821_s1 + $0x8] sm:$0xff] }
  0xa8   :  { %v150_v13 = vsel %vm149_vm4, %v146_v12, %v714_v11  ;;  %v151_v14 = vsel %vm149_vm4, %v671_v37, %v146_v12 }
  0xa9   :  { %v167_v15 = vmul.f32 %v159_v8, %v151_v14  ;;  %v168_v16 = vmul.f32 %v160_v9, %v150_v13  ;;  %v73_v13 = vperm.slane %v749_v42, 0  ;;  %v74_v14 = vperm.slane %v749_v42, 1 }
  0xab   :  { %360 = vmatpush.msra.mxu2 %v167_v15  ;;  %383 = vmatpush.msra.mxu3 %v168_v16 }
  0xae   :  { %v118_v20 = vpop.permute.xlu1 %117  ;;  %v114_v52 = vpop.permute.xlu2 %113 }
  0xaf   :  { %v122_v21 = vsel %vm121_vm5, %v118_v20, %v712_v10  ;;  %v116_v22 = vpop.permute.xlu0 %115  ;;  %v125_v59 = vsel %vm121_vm5, %v712_v10, %v114_v52  ;;  %v102_v10 = vperm.slane %v732_v27, 1 }
  0xb0   :  { %v123_v24 = vsel %vm121_vm5, %v116_v22, %v118_v20  ;;  %v140_v25 = vmul.f32 %v132_v18, %v122_v21  ;;  %v124_v60 = vsel %vm121_vm5, %v114_v52, %v116_v22  ;;  %v137_v8 = vmul.f32 %v129_v57, %v125_v59 }
  0xb1   :  { %v139_v26 = vmul.f32 %v131_v19, %v123_v24  ;;  %v138_v9 = vmul.f32 %v130_v58, %v124_v60  ;;  %v403_v24 = vstv %s824_s4  ;;  %s563_s4 = smov [#allocation8]  }
  0xb2   :  { %384 = vmatpush.msra.mxu3 %v140_v25  ;;  %s432_s19 = sshll.u32 %s563_s4, 4  ;;  %s433_s19 = int_to_ptr.vmem [resolvable:$true] %s432_s19 }
  0xb3   :  { %361 = vmatpush.msra.mxu2 %v139_v26 }
  0xb6   :  { %v738_v31 = vpop.permute.xlu1 %87 }
  0xb7   :  { %v95_v32 = vsel %vm93_vm6, %v738_v31, %v90_v23  ;;  %v172_v33 = vpop.permute.xlu0 %171 }
  0xb8   :  { %v179_v34 = vsel %vm177_vm3, %v172_v33, %v678_v41  ;;  %v180_v35 = vsel %vm177_vm3, %v683_v43, %v172_v33  ;;  %v111_v36 = vmul.f32 %v103_v28, %v95_v32  ;;  %v284_v43 = vld [vmem:[%s823_s3 + $0x8] sm:$0xff] }
  0xb9   :  { %v193_v39 = vmul.f32 %v185_v29, %v180_v35  ;;  %v194_v40 = vmul.f32 %v186_v30, %v179_v34  ;;  %292 = vperm.xlu0 %471, %v284_v43  }
  0xba   :  { %362 = vmatpush.msra.mxu2 %v111_v36 }
  0xbb   :  { %312 = vmatpush.msra.mxu0 %v193_v39  ;;  %335 = vmatpush.msra.mxu1 %v194_v40 }
  0xbd   :  { %313 = vmatpush.msra.mxu0 %v607_v2  ;;  %336 = vmatpush.msra.mxu1 %v621_v3 }
  0xbe   :  { %v59_v41 = vpop.permute.xlu1 %58 }
  0xbf   :  { %v68_v47 = vsel %vm66_vm7, %v59_v41, %v61_v38  ;;  %v92_v48 = vpop.permute.xlu0 %91 }
  0xc0   :  { %v94_v2 = vsel %vm93_vm6, %v90_v23, %v92_v48  ;;  %v83_v3 = vmul.f32 %v75_v44, %v68_v47 }
  0xc1   :  { %v112_v51 = vmul.f32 %v104_v45, %v94_v2 }
  0xc2   :  { %363 = vmatpush.msra.mxu2 %v83_v3 }
  0xc3   :  { %385 = vmatpush.msra.mxu3 %v112_v51  ;;  %452 = vmatmul.msk.f32.vlgmr.msra.gmra.mxu2 %vm295_vm8, %v281_v50 }
  0xc6   :  { %v142_v56 = vpop.permute.xlu1 %141 }
  0xc7   :  { %v152_v61 = vsel %vm149_vm4, %v142_v56, %v671_v37  ;;  %v153_v62 = vsel %vm149_vm4, %v714_v11, %v142_v56  ;;  %v63_v63 = vpop.permute.xlu0 %62  ;;  %v101_v37 = vperm.slane %v732_v27, 0 }
  0xc8   :  { %v67_v0 = vsel %vm66_vm7, %v61_v38, %v63_v63  ;;  %v165_v1 = vmul.f32 %v157_v53, %v153_v62  ;;  %v166_v4 = vmul.f32 %v158_v54, %v152_v61 }
  0xc9   :  { %v84_v6 = vmul.f32 %v76_v55, %v67_v0 }
  0xca   :  { %314 = vmatpush.msra.mxu0 %v165_v1  ;;  %337 = vmatpush.msra.mxu1 %v166_v4 }
  0xcb   :  { %386 = vmatpush.msra.mxu3 %v84_v6  ;;  %453 = vmatmul.msk.f32.gmra.mxu2 %vm295_vm8, %v282_v5 }
  0xcc   :  { %315 = vmatpush.msra.mxu0 %v137_v8  ;;  %338 = vmatpush.msra.mxu1 %v138_v9 }
  0xcd   :  { %454 = vmatmul.msk.f32.vlgmr.msra.gmra.mxu3 %vm295_vm8, %v281_v50 }
  0xce   :  { %v57_v11 = vpop.permute.xlu1 %56 }
  0xcf   :  { %v86_v12 = vpop.permute.xlu0 %85  ;;  %v69_v15 = vsel %vm66_vm7, %v57_v11, %v59_v41  ;;  %v70_v16 = vsel %vm66_vm7, %v63_v63, %v57_v11 }
  0xd0   :  { %v96_v17 = vsel %vm93_vm6, %v86_v12, %v738_v31  ;;  %v97_v18 = vsel %vm93_vm6, %v92_v48, %v86_v12  ;;  %v81_v21 = vmul.f32 %v73_v13, %v70_v16  ;;  %v82_v22 = vmul.f32 %v74_v14, %v69_v15 }
  0xd1   :  { %v109_v19 = vmul.f32 %v101_v37, %v97_v18  ;;  %v110_v20 = vmul.f32 %v102_v10, %v96_v17 }
  0xd3   :  { %316 = vmatpush.msra.mxu0 %v109_v19  ;;  %339 = vmatpush.msra.mxu1 %v110_v20 }
  0xd5   :  { %317 = vmatpush.msra.mxu0 %v81_v21  ;;  %340 = vmatpush.msra.mxu1 %v82_v22 }
  0xd6   :  { %448 = vmatmul.msk.f32.vlgmr.msra.gmra.mxu0 %vm295_vm8, %v281_v50  ;;  %450 = vmatmul.msk.f32.vlgmr.msra.gmra.mxu1 %vm295_vm8, %v281_v50 }
  0xd7   :  { %455 = vmatmul.msk.f32.gmra.mxu3 %vm295_vm8, %v282_v5 }
  0xde   :  { %449 = vmatmul.msk.f32.gmra.mxu0 %vm295_vm8, %v282_v5  ;;  %451 = vmatmul.msk.f32.gmra.mxu1 %vm295_vm8, %v282_v5 }
  0xfe   :  { %v288_v7 = vpop.permute.xlu2 %287 }
 0x12b   :  { %v293_v28 = vpop.permute.xlu0 %292 }
 0x146   :  { %v365_v23 = vpop.f32.mrf.mxu2 }
 0x147   :  { %v366_v25 = vadd.f32 %v365_v23, %v288_v7 }
 0x149   :  { %vm397_vm9 = vcmp.ge.f32.partialorder %v366_v25, 0.0  ;;  %v406_v26 = vmul.f32 %v403_v24, %v366_v25 }
 0x14b   :  { %v414_v27 = vsel %vm397_vm9, %v366_v25, %v406_v26 }
 0x14c   :  { %422 = vst [vmem:[#allocation8 + $0x10] sm:$0xff] %v414_v27 }
 0x14e   :  { %v368_v29 = vpop.f32.mrf.mxu2 }
 0x14f   :  { %v369_v30 = vadd.f32 %v368_v29, %v293_v28 }
 0x150   :  { %v388_v31 = vpop.f32.mrf.mxu3 }
 0x151   :  { %v389_v32 = vadd.f32 %v388_v31, %v288_v7  ;;  %vm401_vm10 = vcmp.ge.f32.partialorder %v369_v30, 0.0  ;;  %v410_v33 = vmul.f32 %v403_v24, %v369_v30 }
 0x153   :  { %vm398_vm11 = vcmp.ge.f32.partialorder %v389_v32, 0.0  ;;  %v407_v34 = vmul.f32 %v403_v24, %v389_v32  ;;  %v319_v35 = vpop.f32.mrf.mxu0  ;;  %v342_v36 = vpop.f32.mrf.mxu1  ;;  %v418_v39 = vsel %vm401_vm10, %v369_v30, %v410_v33 }
 0x154   :  { %v320_v40 = vadd.f32 %v319_v35, %v288_v7  ;;  %v343_v42 = vadd.f32 %v342_v36, %v288_v7  ;;  %426 = vst [vmem:[#allocation8 + $0x30] sm:$0xff] %v418_v39 }
 0x155   :  { %v415_v38 = vsel %vm398_vm11, %v389_v32, %v407_v34 }
 0x156   :  { %423 = vst [vmem:[#allocation8 + $0x18] sm:$0xff] %v415_v38  ;;  %vm395_vm12 = vcmp.ge.f32.partialorder %v320_v40, 0.0  ;;  %v404_v44 = vmul.f32 %v403_v24, %v320_v40  ;;  %vm396_vm13 = vcmp.ge.f32.partialorder %v343_v42, 0.0  ;;  %v405_v45 = vmul.f32 %v403_v24, %v343_v42 }
 0x158   :  { %v412_v41 = vsel %vm395_vm12, %v320_v40, %v404_v44  ;;  %v413_v43 = vsel %vm396_vm13, %v343_v42, %v405_v45 }
 0x159   :  { %420 = vst [vmem:[#allocation8] sm:$0xff] %v412_v41 }
 0x15a   :  { %421 = vst [vmem:[#allocation8 + $0x8] sm:$0xff] %v413_v43  ;;  %v391_v46 = vpop.f32.mrf.mxu3 }
 0x15b   :  { %v392_v47 = vadd.f32 %v391_v46, %v293_v28  ;;  %v322_v48 = vpop.f32.mrf.mxu0  ;;  %v345_v49 = vpop.f32.mrf.mxu1 }
 0x15c   :  { %v323_v2 = vadd.f32 %v322_v48, %v293_v28  ;;  %v346_v3 = vadd.f32 %v345_v49, %v293_v28 }
 0x15d   :  { %vm402_vm14 = vcmp.ge.f32.partialorder %v392_v47, 0.0  ;;  %v411_v50 = vmul.f32 %v403_v24, %v392_v47 }
 0x15e   :  { %vm399_vm15 = vcmp.ge.f32.partialorder %v323_v2, 0.0  ;;  %v408_v51 = vmul.f32 %v403_v24, %v323_v2  ;;  %vm400_vm0 = vcmp.ge.f32.partialorder %v346_v3, 0.0  ;;  %v409_v52 = vmul.f32 %v403_v24, %v346_v3 }
 0x15f   :  { %v419_v53 = vsel %vm402_vm14, %v392_v47, %v411_v50 }
 0x160   :  { %427 = vst [vmem:[#allocation8 + $0x38] sm:$0xff] %v419_v53  ;;  %v416_v54 = vsel %vm399_vm15, %v323_v2, %v408_v51  ;;  %v417_v55 = vsel %vm400_vm0, %v346_v3, %v409_v52 }
 0x161   :  { %424 = vst [vmem:[#allocation8 + $0x20] sm:$0xff] %v416_v54 }
 0x162   :  { %425 = vst [vmem:[#allocation8 + $0x28] sm:$0xff] %v417_v55 }
 0x163   :  { %440 = dma.vmem_to_hbm [thread:$0]  %s433_s19, 1024, %s435_s22, [#allocation5], %s552_s28, %s552_s28, %s553_s29  }
 0x164   :  { %548 = dma.done.wait [#allocation5], 1024  }
 0x165   :  { %549 = vsyncadd [#allocation5], 4294966272 }
 0x166   :  { %445 = vsyncpa [#allocation4], 1 }
 0x167   :  { %446 = vsyncpa [#allocation7], 1 }
 0x168   :  { %447 = vsyncpa [#allocation5], 1 }

</bundles_post_ra>
